<compile_context>
chip_gen: v7x
topology: tpu7x:2x2x1
jax: 0.10.0
libtpu: 0.0.40
codegen_flags: <defaults>
</compile_context>

<pallas_src>
import math

import jax
import jax.numpy as jnp
from jax.experimental import pallas as pl
from jax.experimental.pallas import tpu as pltpu


def _proj_logsoftmax_kernel(x_ref, w_ref, b_ref, o_ref):
    # x_ref: (TM, d_model)   w_ref: (d_model, vocab)
    # b_ref: (1, vocab)      o_ref: (TM, vocab)
    logits = jnp.dot(x_ref[...], w_ref[...],
                     preferred_element_type=jnp.float32)
    logits = logits + b_ref[...].astype(jnp.float32)   # broadcast over rows
    # log_softmax along the last (lane) axis, numerically stable, in f32.
    m = jnp.max(logits, axis=-1, keepdims=True)
    shifted = logits - m
    lse = jnp.log(jnp.sum(jnp.exp(shifted), axis=-1, keepdims=True))
    o_ref[...] = (shifted - lse).astype(o_ref.dtype)


def _round_up(v, mult):
    return ((v + mult - 1) // mult) * mult


def projection_layer(x, w, b, *, tm=256):
    """x: (batch, seq, d_model) -> log_softmax(x @ w + b) : (batch, seq, vocab).

    w is stored as (d_model, vocab) (the transpose of torch's nn.Linear.weight).
    """
    batch, seq, d_model = x.shape
    vocab = w.shape[1]
    m = batch * seq

    # Tile the M axis: multiple of 8 (sublane), capped at `tm`.
    tm = min(tm, _round_up(m, 8))
    m_pad = _round_up(m, tm)

    x2d = x.reshape(m, d_model)
    if m_pad != m:
        x2d = jnp.pad(x2d, ((0, m_pad - m), (0, 0)))
    b2d = b.reshape(1, vocab)

    grid = (m_pad // tm,)

    # Explicit VMEM budget: resident weights/bias + double-buffered x/out
    # tiles + the f32 logits intermediate.  Sized so the compiler neither
    # rejects the block choice nor silently shrinks it.
    isz_x = jnp.dtype(x.dtype).itemsize
    isz_w = jnp.dtype(w.dtype).itemsize
    vmem_needed = (
        d_model * vocab * isz_w          # w (resident)
        + vocab * isz_w                  # b
        + 2 * tm * d_model * isz_x       # x tile, double-buffered
        + 2 * tm * vocab * isz_x         # out tile, double-buffered
        + tm * vocab * 4                 # f32 logits intermediate
    )
    vmem_limit = max(min(int(1.25 * vmem_needed) + (2 << 20), 112 << 20),
                     32 << 20)

    cost = pl.CostEstimate(
        flops=2 * m_pad * d_model * vocab + 5 * m_pad * vocab,
        transcendentals=m_pad * vocab + m_pad,            # exp + log
        bytes_accessed=(m_pad * d_model * isz_x
                        + d_model * vocab * isz_w + vocab * isz_w
                        + m_pad * vocab * isz_x),
    )

    out2d = pl.pallas_call(
        _proj_logsoftmax_kernel,
        out_shape=jax.ShapeDtypeStruct((m_pad, vocab), x.dtype),
        grid=grid,
        in_specs=[
            pl.BlockSpec((tm, d_model), lambda i: (i, 0)),      # x: tiled on M
            pl.BlockSpec((d_model, vocab), lambda i: (0, 0)),   # w: resident
            pl.BlockSpec((1, vocab), lambda i: (0, 0)),         # b: resident
        ],
        out_specs=pl.BlockSpec((tm, vocab), lambda i: (i, 0)),
        compiler_params=pltpu.CompilerParams(
            dimension_semantics=("parallel",),
            vmem_limit_bytes=vmem_limit,
        ),
        cost_estimate=cost,
    )(x2d, w, b2d)

    if m_pad != m:
        out2d = out2d[:m]
    return out2d.reshape(batch, seq, vocab)


def init_params(key, d_model, vocab_size, dtype=jnp.float32):
    """Matches nn.Linear's U(-1/sqrt(fan_in), +1/sqrt(fan_in)) init."""
    k1, k2 = jax.random.split(key)
    lim = 1.0 / math.sqrt(d_model)
    # Stored as (in, out) == torch weight.T
    w = jax.random.uniform(k1, (d_model, vocab_size), dtype, -lim, lim)
    b = jax.random.uniform(k2, (vocab_size,), dtype, -lim, lim)
    return w, b


if __name__ == "__main__":
    key = jax.random.PRNGKey(0)
    batch, seq, d_model, vocab_size = 2, 8, 32, 256

    kx, kp = jax.random.split(key)
    x = jax.random.normal(kx, (batch, seq, d_model), jnp.float32)
    w, b = init_params(kp, d_model, vocab_size)

    out = projection_layer(x, w, b)
    out = jax.block_until_ready(out)

    # Plain-JAX reference: log_softmax(x @ w + b, axis=-1).
    ref = jax.nn.log_softmax(x @ w + b, axis=-1)
    assert out.shape == (batch, seq, vocab_size)
    assert jnp.allclose(out, ref, atol=1e-4, rtol=1e-4)

    print("KERNEL_OK")
</pallas_src>

<mosaic_0001>
module attributes {stable_mosaic.version = 11 : i64} {
  func.func @_proj_logsoftmax_kernel(%arg0: i32, %arg1: memref<16x32xf32, #tpu.memory_space<vmem>>, %arg2: memref<32x256xf32, #tpu.memory_space<vmem>>, %arg3: memref<1x256xf32, #tpu.memory_space<vmem>>, %arg4: memref<16x256xf32, #tpu.memory_space<vmem>>) attributes {dimension_semantics = [#tpu.dimension_semantics<parallel>], iteration_bounds = array<i64: 1>, scalar_prefetch = 0 : i64, scratch_operands = 0 : i64, tpu.core_type = #tpu.core_type<tc>, window_params = [{transform_indices = @transform_0, window_bounds = array<i64: 16, 32>}, {pipeline_mode = #tpu.pipeline_mode<synchronous>, transform_indices = @transform_1, window_bounds = array<i64: 32, 256>}, {pipeline_mode = #tpu.pipeline_mode<synchronous>, transform_indices = @transform_2, window_bounds = array<i64: 1, 256>}, {transform_indices = @transform_3, window_bounds = array<i64: 16, 256>}]} {
    %c0 = arith.constant 0 : index
    %c0_0 = arith.constant 0 : index
    %0 = vector.load %arg1[%c0, %c0_0] : memref<16x32xf32, #tpu.memory_space<vmem>>, vector<16x32xf32>
    %c0_1 = arith.constant 0 : index
    %c0_2 = arith.constant 0 : index
    %1 = vector.load %arg2[%c0_1, %c0_2] : memref<32x256xf32, #tpu.memory_space<vmem>>, vector<32x256xf32>
    %cst = arith.constant dense<0.000000e+00> : vector<16x256xf32>
    %2 = tpu.matmul %0, %1, %cst {dimension_numbers = #tpu.dot_dimension_numbers<[1], [0], [0], [1], [0, 0, 1, 1], [], []>} : vector<16x32xf32>, vector<32x256xf32>, vector<16x256xf32> -> vector<16x256xf32>
    %c0_3 = arith.constant 0 : index
    %c0_4 = arith.constant 0 : index
    %3 = vector.load %arg3[%c0_3, %c0_4] : memref<1x256xf32, #tpu.memory_space<vmem>>, vector<1x256xf32>
    %4 = vector.broadcast %3 : vector<1x256xf32> to vector<16x256xf32>
    %5 = arith.addf %2, %4 : vector<16x256xf32>
    %cst_5 = arith.constant dense<0xFF800000> : vector<16xf32>
    %6 = vector.multi_reduction <maximumf>, %5, %cst_5 [1] : vector<16x256xf32> to vector<16xf32>
    %7 = vector.shape_cast %6 : vector<16xf32> to vector<16x1xf32>
    %8 = vector.broadcast %7 : vector<16x1xf32> to vector<16x256xf32>
    %9 = arith.subf %5, %8 : vector<16x256xf32>
    %10 = math.exp %9 : vector<16x256xf32>
    %cst_6 = arith.constant dense<0.000000e+00> : vector<16xf32>
    %11 = vector.multi_reduction <add>, %10, %cst_6 [1] : vector<16x256xf32> to vector<16xf32>
    %12 = vector.shape_cast %11 : vector<16xf32> to vector<16x1xf32>
    %13 = math.log %12 : vector<16x1xf32>
    %14 = vector.broadcast %13 : vector<16x1xf32> to vector<16x256xf32>
    %15 = arith.subf %9, %14 : vector<16x256xf32>
    %c0_7 = arith.constant 0 : index
    %c0_8 = arith.constant 0 : index
    %16 = vector.load %arg4[%c0_7, %c0_8] : memref<16x256xf32, #tpu.memory_space<vmem>>, vector<16x256xf32>
    tpu.vector_store %arg4[%c0_7, %c0_8], %15 {strides = array<i32>} : memref<16x256xf32, #tpu.memory_space<vmem>>, vector<16x256xf32>,
    return
  }
  func.func @transform_0(%arg0: i32) -> (i32, i32) {
    %c0_i32 = arith.constant 0 : i32
    %c0_i32_0 = arith.constant 0 : i32
    return %arg0, %c0_i32 : i32, i32
  }
  func.func @transform_1(%arg0: i32) -> (i32, i32) {
    %c0_i32 = arith.constant 0 : i32
    %c0_i32_0 = arith.constant 0 : i32
    %c0_i32_1 = arith.constant 0 : i32
    return %c0_i32, %c0_i32_0 : i32, i32
  }
  func.func @transform_2(%arg0: i32) -> (i32, i32) {
    %c0_i32 = arith.constant 0 : i32
    %c0_i32_0 = arith.constant 0 : i32
    %c0_i32_1 = arith.constant 0 : i32
    return %c0_i32, %c0_i32_0 : i32, i32
  }
  func.func @transform_3(%arg0: i32) -> (i32, i32) {
    %c0_i32 = arith.constant 0 : i32
    %c0_i32_0 = arith.constant 0 : i32
    return %arg0, %c0_i32 : i32, i32
  }
}

</mosaic_0001>

<bundles_post_ra>
// kernel: tpu_custom_call.1
= control target key start
LH: loop header
LB: loop body
LE: loop exit
PB: predicated region body
PF: predicated region fallthrough
CT: control target
= control target key end

     0   :  { %8 = vsyncpa [#allocation3], 0  ;;  %s382_s0 = inlined_call_operand.hbm [shape: f32[16,32], index: 0, kind: input, shape index: {}]   ;;  %s383_s1 = inlined_call_operand.hbm [shape: f32[32,256], index: 1, kind: input, shape index: {}]   ;;  %s384_s2 = inlined_call_operand.vmem [shape: f32[1,256], index: 2, kind: input, shape index: {}]   ;;  %s385_s3 = inlined_call_operand.hbm [shape: f32[16,256], index: 3, kind: output, shape index: {}]  }
   0x1   :  { %9 = vsyncpa [#allocation6], 0 }
   0x2   :  { %10 = vsyncpa [#allocation4], 0  ;;  %s309_s12 = smov [#allocation2]   ;;  %s237_s16 = scalar_lea.hbm %s382_s0, 256 }
   0x3   :  { %s16_s13 = sshll.u32 %s309_s12, 4  ;;  %p238_p0 = scmp.ne.s32.totalorder %s382_s0, %s237_s16  ;;  %s17_s13 = int_to_ptr.vmem [resolvable:$true] %s16_s13 }
   0x4   :  { %p241_p1 = scmp.lt.u32.totalorder %s237_s16, %s382_s0 }
   0x6   :  { %p243_p2 = pnand %p241_p1, %p238_p0 }
   0x8   :  { %246 = shalt.err (!%p243_p2)
}
   0x9   :  { %s247_s21 = scalar_lea.vmem %s17_s13, 256  ;;  %p252_p4 = scmp.lt.s32.totalorder %s17_s13, %s17_s13 }
   0xa   :  { %p248_p3 = scmp.ne.s32.totalorder %s17_s13, %s247_s21  ;;  %p253_p5 = scmp.lt.s32.totalorder %s247_s21, %s247_s21 }
   0xc   :  { %p254_p6 = por %p253_p5, %p252_p4 }
   0xe   :  { %p255_p7 = pnand %p254_p6, %p248_p3 }
  0x10   :  { %258 = shalt.err (!%p255_p7)
}
  0x11   :  { %s310_s22 = smov 128   ;;  %s311_s23 = smov 8  }
  0x12   :  { %22 = dma.hbm_to_vmem [thread:$0]  %s382_s0, 256, %s17_s13, [#allocation3], %s310_s22, %s310_s22, %s311_s23  }
  0x13   :  { %s312_s26 = smov [#allocation5]   ;;  %s259_s30 = scalar_lea.hbm %s383_s1, 1024 }
  0x14   :  { %s28_s27 = sshll.u32 %s312_s26, 4  ;;  %p260_p8 = scmp.ne.s32.totalorder %s383_s1, %s259_s30  ;;  %s29_s27 = int_to_ptr.vmem [resolvable:$true] %s28_s27 }
  0x15   :  { %p263_p9 = scmp.lt.u32.totalorder %s259_s30, %s383_s1 }
  0x17   :  { %p265_p10 = pnand %p263_p9, %p260_p8 }
  0x19   :  { %268 = shalt.err (!%p265_p10)
}
  0x1a   :  { %s269_s8 = scalar_lea.vmem %s29_s27, 1024  ;;  %p274_p12 = scmp.lt.s32.totalorder %s29_s27, %s29_s27 }
  0x1b   :  { %p270_p11 = scmp.ne.s32.totalorder %s29_s27, %s269_s8  ;;  %p275_p13 = scmp.lt.s32.totalorder %s269_s8, %s269_s8 }
  0x1d   :  { %p276_p0 = por %p275_p13, %p274_p12 }
  0x1f   :  { %p277_p1 = pnand %p276_p0, %p270_p11 }
  0x21   :  { %280 = shalt.err (!%p277_p1)
}
  0x22   :  { %s313_s0 = smov 256   ;;  %s314_s9 = smov 16  }
  0x23   :  { %34 = dma.hbm_to_vmem [thread:$0]  %s383_s1, 1024, %s29_s27, [#allocation6], %s313_s0, %s313_s0, %s314_s9  }
  0x24   :  { %303 = dma.done.wait [#allocation3], 256  }
  0x25   :  { %304 = vsyncadd [#allocation3], 4294967040 }
  0x26   :  { %305 = dma.done.wait [#allocation6], 1024  }
  0x27   :  { %306 = vsyncadd [#allocation6], 4294966272  ;;  %v315_v0 = vmov 0.0   ;;  %v46_v1 = vld [vmem:[#allocation5 + $0x8] sm:$0xff]  ;;  %v48_v2 = vld [vmem:[#allocation5 + $0x18] sm:$0xff]  ;;  %vm65_vm0 = vcmask 261120   ;;  %v55_v15 = vlaneseq }
  0x28   :  { %136 = vmatprep.mubr.f32.mxu0 %v315_v0  ;;  %142 = vmatprep.mubr.f32.mxu1 %v315_v0  ;;  %v45_v3 = vld [vmem:[#allocation5] sm:$0xff]  ;;  %v205_v4 = vpack.c.bf16 %v48_v2, %v46_v1  ;;  %v47_v5 = vld [vmem:[#allocation5 + $0x10] sm:$0xff]  ;;  %v50_v6 = vld [vmem:[#allocation5 + $0x28] sm:$0xff] }
  0x29   :  { %v52_v7 = vld [vmem:[#allocation5 + $0x38] sm:$0xff]  ;;  %v207_v8 = vpack.c.bf16 %v47_v5, %v45_v3  ;;  %v49_v10 = vld [vmem:[#allocation5 + $0x20] sm:$0xff]  ;;  %v51_v11 = vld [vmem:[#allocation5 + $0x30] sm:$0xff]  ;;  %v56_v16 = vshrl.u32 %v55_v15, 7 }
  0x2a   :  { %v209_v9 = vpack.c.bf16 %v52_v7, %v50_v6  ;;  %206 = vmatprep.subr.bf16.mxu0 %v205_v4  ;;  %213 = vmatprep.subr.bf16.mxu1 %v205_v4  ;;  %v211_v12 = vpack.c.bf16 %v51_v11, %v49_v10  ;;  %v43_v13 = vld [vmem:[#allocation2] sm:$0xff]  ;;  %v44_v14 = vld [vmem:[#allocation2 + $0x8] sm:$0xff] }
  0x2b   :  { %208 = vmatpush1.bf16.msra.mxu0 %v207_v8  ;;  %215 = vmatpush1.bf16.msra.mxu1 %v207_v8  ;;  %v57_v17 = vsub.s32 0, %v56_v16  ;;  %v53_v18 = vld [vmem:[%s384_s2] sm:$0x3]  ;;  %v61_v19 = vsub.s32 1, %v56_v16  ;;  %s316_s2 = smov [#allocation7]  }
  0x2c   :  { %210 = vmatprep.subr.bf16.mxu0 %v209_v9  ;;  %214 = vmatprep.subr.bf16.mxu1 %v209_v9  ;;  %s190_s13 = sshll.u32 %s316_s2, 4  ;;  %s191_s13 = int_to_ptr.vmem [resolvable:$true] %s190_s13 }
  0x2d   :  { %v58_v20 = vrot.slane %v53_v18, %v57_v17  ;;  %v62_v21 = vrot.slane %v53_v18, %v61_v19  ;;  %s281_s14 = scalar_lea.vmem %s191_s13, 512  ;;  %p286_p3 = scmp.lt.s32.totalorder %s191_s13, %s191_s13 }
  0x2e   :  { %p282_p2 = scmp.ne.s32.totalorder %s191_s13, %s281_s14  ;;  %p287_p4 = scmp.lt.s32.totalorder %s281_s14, %s281_s14 }
  0x2f   :  { %212 = vmatpush1.bf16.msra.mxu0 %v211_v12  ;;  %216 = vmatpush1.bf16.msra.mxu1 %v211_v12 }
  0x30   :  { %p288_p5 = por %p287_p4, %p286_p3 }
  0x32   :  { %203 = vmatmul.mubr.msk.f32.vlgmr.msra.gmra.mrb[0].mxu0 %vm65_vm0, %v43_v13  ;;  %204 = vmatmul.mubr.msk.f32.vlgmr.msra.gmra.mrb[0].mxu1 %vm65_vm0, %v44_v14  ;;  %p289_p6 = pnand %p288_p5, %p282_p2 }
 0x105   :  { %v138_v22 = vpop.f32.mrb[0].mxu0  ;;  %v144_v23 = vpop.f32.mrb[0].mxu1 }
 0x106   :  { %v139_v24 = vadd.f32 %v138_v22, %v58_v20  ;;  %v140_v25 = vpop.f32.mrb[1].mxu0  ;;  %v146_v26 = vpop.f32.mrb[1].mxu1  ;;  %v145_v28 = vadd.f32 %v144_v23, %v58_v20 }
 0x107   :  { %v141_v27 = vadd.f32 %v140_v25, %v62_v21  ;;  %v147_v29 = vadd.f32 %v146_v26, %v62_v21 }
 0x109   :  { %v149_v30 = vmax.f32 %v139_v24, %v141_v27  ;;  %v152_v31 = vmax.f32 %v145_v28, %v147_v29 }
 0x10b   :  { %150 = vmax.xlane.f32.xlu0 %v149_v30 }
 0x10f   :  { %153 = vmax.xlane.f32.xlu0 %v152_v31 }
 0x198   :  { %v151_v32 = vpop.xlane.xlu0 %150 }
 0x199   :  { %v155_v33 = vsub.f32 %v139_v24, %v151_v32  ;;  %v156_v34 = vsub.f32 %v141_v27, %v151_v32 }
 0x19b   :  { %v159_v35 = vmul.f32 1.442695, %v155_v33  ;;  %v161_v36 = vmul.f32 1.442695, %v156_v34 }
 0x19c   :  { %v154_v37 = vpop.xlane.xlu0 %153 }
 0x19d   :  { %225 = vpow2.f32 %v159_v35  ;;  %v157_v38 = vsub.f32 %v145_v28, %v154_v37  ;;  %v158_v39 = vsub.f32 %v147_v29, %v154_v37 }
 0x19e   :  { %227 = vpow2.f32 %v161_v36 }
 0x19f   :  { %v163_v40 = vmul.f32 1.442695, %v157_v38  ;;  %v165_v41 = vmul.f32 1.442695, %v158_v39 }
 0x1a1   :  { %229 = vpow2.f32 %v163_v40 }
 0x1a2   :  { %231 = vpow2.f32 %v165_v41 }
 0x1a7   :  { %v226_v42 = vpop.eup %225 }
 0x1a8   :  { %v228_v43 = vpop.eup %227 }
 0x1a9   :  { %v167_v44 = vadd.f32 %v228_v43, %v226_v42 }
 0x1ab   :  { %v230_v45 = vpop.eup %229  ;;  %168 = vadd.xlane.f32.xlu1 %v167_v44 }
 0x1ac   :  { %v232_v46 = vpop.eup %231 }
 0x1ad   :  { %v170_v47 = vadd.f32 %v232_v46, %v230_v45 }
 0x1af   :  { %171 = vadd.xlane.f32.xlu1 %v170_v47 }
 0x238   :  { %v169_v48 = vpop.xlane.xlu1 %168 }
 0x239   :  { %233 = vlog2.f32 %v169_v48 }
 0x23c   :  { %v172_v49 = vpop.xlane.xlu1 %171 }
 0x23d   :  { %235 = vlog2.f32 %v172_v49 }
 0x243   :  { %v234_v50 = vpop.eup %233 }
 0x244   :  { %v174_v51 = vmul.f32 0.6931472, %v234_v50 }
 0x246   :  { %v177_v52 = vsub.f32 %v155_v33, %v174_v51  ;;  %v178_v53 = vsub.f32 %v156_v34, %v174_v51 }
 0x247   :  { %v236_v54 = vpop.eup %235 }
 0x248   :  { %181 = vst [vmem:[#allocation7] sm:$0xff] %v177_v52  ;;  %182 = vst [vmem:[#allocation7 + $0x8] sm:$0xff] %v178_v53  ;;  %v176_v55 = vmul.f32 0.6931472, %v236_v54 }
 0x24a   :  { %v179_v56 = vsub.f32 %v157_v38, %v176_v55  ;;  %v180_v57 = vsub.f32 %v158_v39, %v176_v55 }
 0x24c   :  { %183 = vst [vmem:[#allocation7 + $0x10] sm:$0xff] %v179_v56  ;;  %184 = vst [vmem:[#allocation7 + $0x18] sm:$0xff] %v180_v57 }
 0x24d   :  { %292 = shalt.err (!%p289_p6)
}
 0x24e   :  { %s293_s17 = scalar_lea.hbm %s385_s3, 512 }
 0x24f   :  { %p294_p7 = scmp.ne.s32.totalorder %s385_s3, %s293_s17  ;;  %p297_p8 = scmp.lt.u32.totalorder %s293_s17, %s385_s3 }
 0x251   :  { %p299_p9 = pnand %p297_p8, %p294_p7 }
 0x253   :  { %302 = shalt.err (!%p299_p9)
}
 0x254   :  { %196 = dma.vmem_to_hbm [thread:$0]  %s191_s13, 512, %s385_s3, [#allocation4], %s313_s0, %s313_s0, %s314_s9  }
 0x255   :  { %307 = dma.done.wait [#allocation4], 512  }
 0x256   :  { %308 = vsyncadd [#allocation4], 4294966784 }
 0x257   :  { %200 = vsyncpa [#allocation3], 1 }
 0x258   :  { %201 = vsyncpa [#allocation6], 1 }
 0x259   :  { %202 = vsyncpa [#allocation4], 1 }

</bundles_post_ra>
